<compile_context>
chip_gen: v7x
topology: tpu7x:2x2x1
jax: 0.10.0
libtpu: 0.0.40
codegen_flags: <defaults>
</compile_context>

<pallas_src>
import jax
import jax.numpy as jnp
import numpy as np
from jax.experimental import pallas as pl
from jax.experimental.pallas import tpu as pltpu


# ----------------------------------------------------------------------------
# Kernel
# ----------------------------------------------------------------------------
def _make_warp_kernel(C, Hin, Win, Qt, use_mask, cdtype, two_stage,
                      separable_ok, sx, sy, ox, oy):
    HW = Hin * Win

    def kernel(base_ref, flow_ref, feat_ref, out_ref):
        # base_ref: (2, Qt)   f32 pixel coords of the query grid (x row0, y row1)
        # flow_ref: (1, 2, Qt) f32 optical flow (x row0, y row1)
        # feat_ref: (1, C, Hin*Win) or (1, C*Hin, Win), dtype = cdtype
        # out_ref:  (1, C, Qt)
        base = base_ref[...]
        fl = flow_ref[0]
        # coords_grid normalization fused with grid_sample unnormalization:
        # sample position in feat pixel space.
        ix = (base[0:1, :] + fl[0:1, :]) * sx + ox            # (1, Qt)
        iy = (base[1:2, :] + fl[1:2, :]) * sy + oy
        x0 = jnp.floor(ix)
        y0 = jnp.floor(iy)
        tx = ix - x0                                          # fractional parts
        ty = iy - y0
        x0i = x0.astype(jnp.int32)
        y0i = y0.astype(jnp.int32)

        # One-hot bilinear weights along each axis, built in f32 (also used for
        # the validity mask).  Out-of-bounds taps vanish because the iota only
        # covers [0, Win) / [0, Hin)  (== 'zeros' padding).
        xi = jax.lax.broadcasted_iota(jnp.int32, (Win, Qt), 0)
        yi = jax.lax.broadcasted_iota(jnp.int32, (Hin, Qt), 0)
        wx = (jnp.where(xi == x0i, 1.0 - tx, 0.0)
              + jnp.where(xi == x0i + 1, tx, 0.0))            # (Win, Qt) f32
        wy = (jnp.where(yi == y0i, 1.0 - ty, 0.0)
              + jnp.where(yi == y0i + 1, ty, 0.0))            # (Hin, Qt) f32

        feat2 = feat_ref[0]                                    # cdtype

        if two_stage:
            # Small-C separable path: contract Win on the MXU, then the Hin
            # contraction is a cheap (C, Hin, Qt) multiply-reduce on the VPU.
            tmp = jnp.dot(feat2, wx.astype(cdtype),
                          preferred_element_type=jnp.float32)  # (C*Hin, Qt)
            acc = jnp.sum(tmp.reshape(C, Hin, Qt) * wy[None, :, :], axis=1)
        else:
            if separable_ok:
                # Win is sublane-aligned for cdtype -> layout-free collapse.
                w_full = (wy.astype(cdtype)[:, None, :]
                          * wx.astype(cdtype)[None, :, :]).reshape(HW, Qt)
            else:
                # Build directly at (HW, Qt) via flat-index compares — avoids a
                # relayout copy and vector integer div/mod.
                vx0 = (x0i >= 0) & (x0i < Win)
                vx1 = (x0i >= -1) & (x0i < Win - 1)
                vy0 = (y0i >= 0) & (y0i < Hin)
                vy1 = (y0i >= -1) & (y0i < Hin - 1)
                w00 = jnp.where(vy0 & vx0, (1.0 - ty) * (1.0 - tx), 0.0)
                w01 = jnp.where(vy0 & vx1, (1.0 - ty) * tx, 0.0)
                w10 = jnp.where(vy1 & vx0, ty * (1.0 - tx), 0.0)
                w11 = jnp.where(vy1 & vx1, ty * tx, 0.0)
                p00 = y0i * Win + x0i
                pidx = jax.lax.broadcasted_iota(jnp.int32, (HW, Qt), 0)
                wf = (jnp.where(pidx == p00, w00, 0.0)
                      + jnp.where(pidx == p00 + 1, w01, 0.0)
                      + jnp.where(pidx == p00 + Win, w10, 0.0)
                      + jnp.where(pidx == p00 + Win + 1, w11, 0.0))
                w_full = wf.astype(cdtype)
            acc = jnp.dot(feat2, w_full,
                          preferred_element_type=jnp.float32)  # (C, Qt) on MXU

        if use_mask:
            # grid_sample(ones) == valid bilinear weight sum, separable per
            # axis; kept in f32 so the threshold is numerically stable.
            wsum = (jnp.sum(wy, axis=0, keepdims=True)
                    * jnp.sum(wx, axis=0, keepdims=True))       # (1, Qt)
            acc = jnp.where(wsum > 0.9999, acc, 0.0)

        out_ref[0] = acc.astype(out_ref.dtype)

    return kernel


# ----------------------------------------------------------------------------
# VMEM budgeting / tile selection
# ----------------------------------------------------------------------------
def _vmem_budget_bytes():
    """Generation-aware scoped-VMEM budget (bytes)."""
    try:
        cap = getattr(pltpu.get_tpu_info(), "vmem_capacity_bytes", None)
        if cap:
            return min(int(cap) * 3 // 4, 100 * 1024 * 1024)
    except Exception:
        pass
    # Safe on every generation (v7x has 64 MiB physical VMEM per TC).
    return 48 * 1024 * 1024


def _tile_vmem_bytes(Qt, C, Hin, Win, cbytes, obytes, two_stage, separable_ok):
    """Estimated per-step VMEM footprint (double buffers + intermediates)."""
    HW = Hin * Win
    total = 0
    total += 2 * 2 * Qt * 4                       # base grid tile (2 bufs)
    total += 2 * 2 * Qt * 4                       # flow tile (2 bufs)
    total += 2 * C * HW * cbytes                  # feat block (revisited, 2 bufs)
    total += 2 * C * Qt * obytes                  # output tile (2 bufs)
    total += (Hin + Win) * Qt * (4 + cbytes)      # wy/wx f32 build + cdtype copy
    total += 2 * C * Qt * 4                       # f32 accumulator / mask temp
    if two_stage:
        total += 3 * C * Hin * Qt * 4             # tmp + product + reduce temps
    else:
        total += 2 * HW * Qt * cbytes             # w_full + outer-product temp
        if not separable_ok:
            total += HW * Qt * 4                  # f32 flat-build temporaries
    return int(total * 1.25) + (1 << 20)


def _pick_qt(Q, C, Hin, Win, cbytes, obytes, two_stage, separable_ok, budget):
    """Largest lane-dense query tile (multiples of 256 preferred for the
    256-wide MXUs on v6e/v7x) whose footprint fits the VMEM budget."""
    q128 = max(128, pl.cdiv(Q, 128) * 128)
    for qt in (1024, 768, 512, 256, 128):
        if qt > q128:
            continue
        if _tile_vmem_bytes(qt, C, Hin, Win, cbytes, obytes,
                            two_stage, separable_ok) <= budget:
            return qt
    # Smallest lane-dense tile; vmem_limit_bytes is raised to `budget` by the
    # caller.  TODO(synk): K-band the Hin axis for gigantic Hin*Win maps.
    return 128


# ----------------------------------------------------------------------------
# Wrapper
# ----------------------------------------------------------------------------
def warp(feat, flow, *, align_corners=False, use_mask=True,
         compute_dtype=jnp.bfloat16, qt=None, force_path=None):
    """Pallas implementation of mmflow Warp.forward (bilinear, zeros padding).

    compute_dtype: dtype fed to the MXU (feat + bilinear weights); accumulation
        is always f32.  Default bf16 (MXU-native on v5e/v6e/v7x).
    force_path: None (auto) | "matmul" | "two_stage".
    """
    B, C, Hin, Win = feat.shape
    Bf, two, H, W = flow.shape
    assert Bf == B and two == 2

    out_dtype = feat.dtype
    cdtype = jnp.dtype(compute_dtype)
    cbytes = cdtype.itemsize
    obytes = jnp.dtype(out_dtype).itemsize
    Q = H * W

    # Fused affine: ix = (x + flow_x) * sx + ox in feat pixel space.
    if align_corners:
        sx, ox = (Win - 1) / max(W - 1, 1), 0.0
        sy, oy = (Hin - 1) / max(H - 1, 1), 0.0
    else:
        sx, ox = Win / max(W - 1, 1), -0.5
        sy, oy = Hin / max(H - 1, 1), -0.5

    # Path selection (perf only; both paths compute the same result).
    if force_path == "matmul":
        two_stage = False
    elif force_path == "two_stage":
        two_stage = (Hin % 8 == 0)            # tmp reshape must be free
    else:
        two_stage = (C < Win) and (Hin % 8 == 0)
    sub = 8 * (4 // cbytes)                   # sublane packing of compute dtype
    separable_ok = (Win % sub == 0)

    budget = _vmem_budget_bytes()
    Qt = qt or _pick_qt(Q, C, Hin, Win, cbytes, obytes, two_stage,
                        separable_ok, budget)
    Qpad = pl.cdiv(Q, Qt) * Qt

    # Tiny shared pixel base grid (x row 0, y row 1) — avoids both a (B, 2, Q)
    # HBM coords intermediate and in-kernel vector integer div/mod.
    yy, xx = jnp.meshgrid(jnp.arange(H, dtype=jnp.float32),
                          jnp.arange(W, dtype=jnp.float32), indexing="ij")
    base = jnp.stack([xx, yy], axis=0).reshape(2, Q)
    flow_flat = flow.astype(jnp.float32).reshape(B, 2, Q)
    if Qpad != Q:
        # Padded queries point far outside -> all weights zero -> sliced off.
        base = jnp.pad(base, ((0, 0), (0, Qpad - Q)), constant_values=-1.0e4)
        flow_flat = jnp.pad(flow_flat, ((0, 0), (0, 0), (0, Qpad - Q)))

    if two_stage:
        feat_flat = feat.astype(cdtype).reshape(B, C * Hin, Win)
        feat_spec = pl.BlockSpec((1, C * Hin, Win), lambda b, q: (b, 0, 0))
    else:
        feat_flat = feat.astype(cdtype).reshape(B, C, Hin * Win)
        feat_spec = pl.BlockSpec((1, C, Hin * Win), lambda b, q: (b, 0, 0))

    kernel = _make_warp_kernel(C, Hin, Win, Qt, use_mask, cdtype, two_stage,
                               separable_ok, sx, sy, ox, oy)
    out = pl.pallas_call(
        kernel,
        out_shape=jax.ShapeDtypeStruct((B, C, Qpad), out_dtype),
        grid=(B, Qpad // Qt),
        in_specs=[
            pl.BlockSpec((2, Qt), lambda b, q: (0, q)),
            pl.BlockSpec((1, 2, Qt), lambda b, q: (b, 0, q)),
            feat_spec,   # constant across q -> DMA'd once per batch element
        ],
        out_specs=pl.BlockSpec((1, C, Qt), lambda b, q: (b, 0, q)),
        compiler_params=pltpu.CompilerParams(
            dimension_semantics=("parallel", "parallel"),
            vmem_limit_bytes=int(budget)),
    )(base, flow_flat, feat_flat)

    return out[:, :, :Q].reshape(B, C, H, W)


# ----------------------------------------------------------------------------
# Pure-JAX reference (matches F.grid_sample bilinear / zeros / AC=False)
# ----------------------------------------------------------------------------
def _warp_ref(feat, flow, *, align_corners=False, use_mask=True):
    feat = feat.astype(jnp.float32)
    flow = flow.astype(jnp.float32)
    B, C, Hin, Win = feat.shape
    _, _, H, W = flow.shape
    yy, xx = jnp.meshgrid(jnp.arange(H, dtype=jnp.float32),
                          jnp.arange(W, dtype=jnp.float32), indexing="ij")
    gx = xx[None] + flow[:, 0]
    gy = yy[None] + flow[:, 1]
    gxn = gx * (2.0 / max(W - 1, 1)) - 1.0
    gyn = gy * (2.0 / max(H - 1, 1)) - 1.0
    if align_corners:
        ix = (gxn + 1.0) * 0.5 * (Win - 1)
        iy = (gyn + 1.0) * 0.5 * (Hin - 1)
    else:
        ix = ((gxn + 1.0) * Win - 1.0) * 0.5
        iy = ((gyn + 1.0) * Hin - 1.0) * 0.5
    x0 = jnp.floor(ix)
    y0 = jnp.floor(iy)
    tx = ix - x0
    ty = iy - y0
    x0i = x0.astype(jnp.int32)
    y0i = y0.astype(jnp.int32)

    def tap(fb, yi_, xi_):
        valid = ((yi_ >= 0) & (yi_ < Hin) & (xi_ >= 0) & (xi_ < Win))
        yc = jnp.clip(yi_, 0, Hin - 1)
        xc = jnp.clip(xi_, 0, Win - 1)
        v = fb[:, yc, xc]                            # (C, H, W)
        m = valid.astype(jnp.float32)
        return v * m[None], m

    def one_batch(fb, x0b, y0b, txb, tyb):
        v00, m00 = tap(fb, y0b, x0b)
        v01, m01 = tap(fb, y0b, x0b + 1)
        v10, m10 = tap(fb, y0b + 1, x0b)
        v11, m11 = tap(fb, y0b + 1, x0b + 1)
        w00 = (1 - tyb) * (1 - txb)
        w01 = (1 - tyb) * txb
        w10 = tyb * (1 - txb)
        w11 = tyb * txb
        out = (w00[None] * v00 + w01[None] * v01
               + w10[None] * v10 + w11[None] * v11)
        if use_mask:
            wsum = w00 * m00 + w01 * m01 + w10 * m10 + w11 * m11
            out = out * (wsum > 0.9999).astype(jnp.float32)[None]
        return out

    return jax.vmap(one_batch)(feat, x0i, y0i, tx, ty)


if __name__ == "__main__":
    key = jax.random.PRNGKey(0)
    B, C, H, W = 2, 4, 16, 16

    kf, kw = jax.random.split(key)
    feat = jax.random.normal(kf, (B, C, H, W), dtype=jnp.float32)
    flow = jax.random.normal(kw, (B, 2, H, W), dtype=jnp.float32) * 3.0

    ref = _warp_ref(feat, flow)

    # Default config: bf16 MXU feed, auto path (two-stage since C < Win).
    out = jax.block_until_ready(warp(feat, flow))
    assert out.shape == (B, C, H, W), out.shape
    assert out.dtype == feat.dtype, out.dtype
    np.testing.assert_allclose(np.asarray(out), np.asarray(ref),
                               rtol=5e-2, atol=5e-2)

    # f32 compute, both kernel paths, tight tolerance vs the reference.
    out_mm = jax.block_until_ready(
        warp(feat, flow, compute_dtype=jnp.float32, force_path="matmul"))
    np.testing.assert_allclose(np.asarray(out_mm), np.asarray(ref),
                               rtol=5e-4, atol=5e-4)
    out_ts = jax.block_until_ready(
        warp(feat, flow, compute_dtype=jnp.float32, force_path="two_stage"))
    np.testing.assert_allclose(np.asarray(out_ts), np.asarray(ref),
                               rtol=5e-4, atol=5e-4)

    # Non-aligned spatial size: exercises query padding + the direct flat
    # weight build (Win not sublane-aligned).
    B2, C2, H2, W2 = 2, 4, 12, 12
    kf2, kw2 = jax.random.split(jax.random.PRNGKey(1))
    feat2 = jax.random.normal(kf2, (B2, C2, H2, W2), dtype=jnp.float32)
    flow2 = jax.random.normal(kw2, (B2, 2, H2, W2), dtype=jnp.float32) * 4.0
    ref2 = _warp_ref(feat2, flow2)
    out2 = jax.block_until_ready(
        warp(feat2, flow2, compute_dtype=jnp.float32, force_path="matmul"))
    np.testing.assert_allclose(np.asarray(out2), np.asarray(ref2),
                               rtol=5e-4, atol=5e-4)

    print("KERNEL_OK")
</pallas_src>

<mosaic_0001>
module attributes {stable_mosaic.version = 11 : i64} {
  func.func @kernel(%arg0: i32, %arg1: i32, %arg2: memref<2x256xf32, #tpu.memory_space<vmem>>, %arg3: memref<1x2x256xf32, #tpu.memory_space<vmem>>, %arg4: memref<1x64x16xbf16, #tpu.memory_space<vmem>>, %arg5: memref<1x4x256xf32, #tpu.memory_space<vmem>>) attributes {dimension_semantics = [#tpu.dimension_semantics<parallel>, #tpu.dimension_semantics<parallel>], iteration_bounds = array<i64: 2, 1>, scalar_prefetch = 0 : i64, scratch_operands = 0 : i64, tpu.core_type = #tpu.core_type<tc>, window_params = [{transform_indices = @transform_0, window_bounds = array<i64: 2, 256>}, {transform_indices = @transform_1, window_bounds = array<i64: 1, 2, 256>}, {transform_indices = @transform_2, window_bounds = array<i64: 1, 64, 16>}, {transform_indices = @transform_3, window_bounds = array<i64: 1, 4, 256>}]} {
    %c0 = arith.constant 0 : index
    %c0_0 = arith.constant 0 : index
    %0 = vector.load %arg2[%c0, %c0_0] : memref<2x256xf32, #tpu.memory_space<vmem>>, vector<2x256xf32>
    %c0_1 = arith.constant 0 : index
    %c0_2 = arith.constant 0 : index
    %c0_3 = arith.constant 0 : index
    %1 = vector.load %arg3[%c0_1, %c0_2, %c0_3] : memref<1x2x256xf32, #tpu.memory_space<vmem>>, vector<1x2x256xf32>
    %2 = vector.shape_cast %1 : vector<1x2x256xf32> to vector<2x256xf32>
    %3 = vector.extract_strided_slice %0 {offsets = [0, 0], sizes = [1, 256], strides = [1, 1]} : vector<2x256xf32> to vector<1x256xf32>
    %4 = vector.extract_strided_slice %2 {offsets = [0, 0], sizes = [1, 256], strides = [1, 1]} : vector<2x256xf32> to vector<1x256xf32>
    %5 = arith.addf %3, %4 : vector<1x256xf32>
    %cst = arith.constant 1.06666672 : f32
    %6 = vector.broadcast %cst : f32 to vector<1x256xf32>
    %7 = arith.mulf %5, %6 : vector<1x256xf32>
    %cst_4 = arith.constant -5.000000e-01 : f32
    %8 = vector.broadcast %cst_4 : f32 to vector<1x256xf32>
    %9 = arith.addf %7, %8 : vector<1x256xf32>
    %10 = vector.extract_strided_slice %0 {offsets = [1, 0], sizes = [1, 256], strides = [1, 1]} : vector<2x256xf32> to vector<1x256xf32>
    %11 = vector.extract_strided_slice %2 {offsets = [1, 0], sizes = [1, 256], strides = [1, 1]} : vector<2x256xf32> to vector<1x256xf32>
    %12 = arith.addf %10, %11 : vector<1x256xf32>
    %cst_5 = arith.constant 1.06666672 : f32
    %13 = vector.broadcast %cst_5 : f32 to vector<1x256xf32>
    %14 = arith.mulf %12, %13 : vector<1x256xf32>
    %cst_6 = arith.constant -5.000000e-01 : f32
    %15 = vector.broadcast %cst_6 : f32 to vector<1x256xf32>
    %16 = arith.addf %14, %15 : vector<1x256xf32>
    %17 = math.floor %9 : vector<1x256xf32>
    %18 = math.floor %16 : vector<1x256xf32>
    %19 = arith.subf %9, %17 : vector<1x256xf32>
    %20 = arith.subf %16, %18 : vector<1x256xf32>
    %21 = arith.fptosi %17 : vector<1x256xf32> to vector<1x256xi32>
    %22 = arith.fptosi %18 : vector<1x256xf32> to vector<1x256xi32>
    %23 = tpu.iota {dimensions = array<i32: 0>} : vector<16x256xi32>
    %24 = tpu.iota {dimensions = array<i32: 0>} : vector<16x256xi32>
    %25 = vector.broadcast %21 : vector<1x256xi32> to vector<16x256xi32>
    %26 = arith.cmpi eq, %23, %25 : vector<16x256xi32>
    %cst_7 = arith.constant 1.000000e+00 : f32
    %27 = vector.broadcast %cst_7 : f32 to vector<1x256xf32>
    %28 = arith.subf %27, %19 : vector<1x256xf32>
    %cst_8 = arith.constant 0.000000e+00 : f32
    %29 = vector.shape_cast %28 : vector<1x256xf32> to vector<1x256xf32>
    %30 = vector.broadcast %29 : vector<1x256xf32> to vector<16x256xf32>
    %31 = vector.broadcast %cst_8 : f32 to vector<16x256xf32>
    %32 = arith.select %26, %30, %31 : vector<16x256xi1>, vector<16x256xf32>
    %c1_i32 = arith.constant 1 : i32
    %33 = vector.broadcast %c1_i32 : i32 to vector<1x256xi32>
    %34 = arith.addi %21, %33 : vector<1x256xi32>
    %35 = vector.broadcast %34 : vector<1x256xi32> to vector<16x256xi32>
    %36 = arith.cmpi eq, %23, %35 : vector<16x256xi32>
    %cst_9 = arith.constant 0.000000e+00 : f32
    %37 = vector.shape_cast %19 : vector<1x256xf32> to vector<1x256xf32>
    %38 = vector.broadcast %37 : vector<1x256xf32> to vector<16x256xf32>
    %39 = vector.broadcast %cst_9 : f32 to vector<16x256xf32>
    %40 = arith.select %36, %38, %39 : vector<16x256xi1>, vector<16x256xf32>
    %41 = arith.addf %32, %40 : vector<16x256xf32>
    %42 = vector.broadcast %22 : vector<1x256xi32> to vector<16x256xi32>
    %43 = arith.cmpi eq, %24, %42 : vector<16x256xi32>
    %cst_10 = arith.constant 1.000000e+00 : f32
    %44 = vector.broadcast %cst_10 : f32 to vector<1x256xf32>
    %45 = arith.subf %44, %20 : vector<1x256xf32>
    %cst_11 = arith.constant 0.000000e+00 : f32
    %46 = vector.shape_cast %45 : vector<1x256xf32> to vector<1x256xf32>
    %47 = vector.broadcast %46 : vector<1x256xf32> to vector<16x256xf32>
    %48 = vector.broadcast %cst_11 : f32 to vector<16x256xf32>
    %49 = arith.select %43, %47, %48 : vector<16x256xi1>, vector<16x256xf32>
    %c1_i32_12 = arith.constant 1 : i32
    %50 = vector.broadcast %c1_i32_12 : i32 to vector<1x256xi32>
    %51 = arith.addi %22, %50 : vector<1x256xi32>
    %52 = vector.broadcast %51 : vector<1x256xi32> to vector<16x256xi32>
    %53 = arith.cmpi eq, %24, %52 : vector<16x256xi32>
    %cst_13 = arith.constant 0.000000e+00 : f32
    %54 = vector.shape_cast %20 : vector<1x256xf32> to vector<1x256xf32>
    %55 = vector.broadcast %54 : vector<1x256xf32> to vector<16x256xf32>
    %56 = vector.broadcast %cst_13 : f32 to vector<16x256xf32>
    %57 = arith.select %53, %55, %56 : vector<16x256xi1>, vector<16x256xf32>
    %58 = arith.addf %49, %57 : vector<16x256xf32>
    %c0_14 = arith.constant 0 : index
    %c0_15 = arith.constant 0 : index
    %c0_16 = arith.constant 0 : index
    %59 = vector.load %arg4[%c0_14, %c0_15, %c0_16] : memref<1x64x16xbf16, #tpu.memory_space<vmem>>, vector<1x64x16xbf16>
    %60 = vector.shape_cast %59 : vector<1x64x16xbf16> to vector<64x16xbf16>
    %61 = arith.truncf %41 : vector<16x256xf32> to vector<16x256xbf16>
    %cst_17 = arith.constant dense<0.000000e+00> : vector<64x256xf32>
    %62 = tpu.matmul %60, %61, %cst_17 {dimension_numbers = #tpu.dot_dimension_numbers<[1], [0], [0], [1], [0, 0, 1, 1], [], []>} : vector<64x16xbf16>, vector<16x256xbf16>, vector<64x256xf32> -> vector<64x256xf32>
    %63 = vector.shape_cast %62 : vector<64x256xf32> to vector<4x16x256xf32>
    %64 = vector.shape_cast %58 : vector<16x256xf32> to vector<1x16x256xf32>
    %65 = vector.broadcast %64 : vector<1x16x256xf32> to vector<4x16x256xf32>
    %66 = arith.mulf %63, %65 : vector<4x16x256xf32>
    %cst_18 = arith.constant dense<0.000000e+00> : vector<4x256xf32>
    %67 = vector.multi_reduction <add>, %66, %cst_18 [1] : vector<4x16x256xf32> to vector<4x256xf32>
    %cst_19 = arith.constant dense<0.000000e+00> : vector<256xf32>
    %68 = vector.multi_reduction <add>, %58, %cst_19 [0] : vector<16x256xf32> to vector<256xf32>
    %69 = vector.shape_cast %68 : vector<256xf32> to vector<1x256xf32>
    %cst_20 = arith.constant dense<0.000000e+00> : vector<256xf32>
    %70 = vector.multi_reduction <add>, %41, %cst_20 [0] : vector<16x256xf32> to vector<256xf32>
    %71 = vector.shape_cast %70 : vector<256xf32> to vector<1x256xf32>
    %72 = arith.mulf %69, %71 : vector<1x256xf32>
    %cst_21 = arith.constant 0.999899983 : f32
    %73 = vector.broadcast %cst_21 : f32 to vector<1x256xf32>
    %74 = arith.cmpf ogt, %72, %73 : vector<1x256xf32>
    %cst_22 = arith.constant 0.000000e+00 : f32
    %75 = vector.shape_cast %74 : vector<1x256xi1> to vector<1x256xi1>
    %76 = vector.broadcast %75 : vector<1x256xi1> to vector<4x256xi1>
    %77 = vector.broadcast %cst_22 : f32 to vector<4x256xf32>
    %78 = arith.select %76, %67, %77 : vector<4x256xi1>, vector<4x256xf32>
    %c0_23 = arith.constant 0 : index
    %c0_24 = arith.constant 0 : index
    %c0_25 = arith.constant 0 : index
    %79 = vector.load %arg5[%c0_23, %c0_24, %c0_25] : memref<1x4x256xf32, #tpu.memory_space<vmem>>, vector<1x4x256xf32>
    %80 = vector.shape_cast %79 : vector<1x4x256xf32> to vector<4x256xf32>
    %81 = vector.shape_cast %78 : vector<4x256xf32> to vector<1x4x256xf32>
    tpu.vector_store %arg5[%c0_23, %c0_24, %c0_25], %81 {strides = array<i32>} : memref<1x4x256xf32, #tpu.memory_space<vmem>>, vector<1x4x256xf32>,
    return
  }
  func.func @transform_0(%arg0: i32, %arg1: i32) -> (i32, i32) {
    %c0_i32 = arith.constant 0 : i32
    %c0_i32_0 = arith.constant 0 : i32
    return %c0_i32, %arg1 : i32, i32
  }
  func.func @transform_1(%arg0: i32, %arg1: i32) -> (i32, i32, i32) {
    %c0_i32 = arith.constant 0 : i32
    %c0_i32_0 = arith.constant 0 : i32
    return %arg0, %c0_i32, %arg1 : i32, i32, i32
  }
  func.func @transform_2(%arg0: i32, %arg1: i32) -> (i32, i32, i32) {
    %c0_i32 = arith.constant 0 : i32
    %c0_i32_0 = arith.constant 0 : i32
    %c0_i32_1 = arith.constant 0 : i32
    return %arg0, %c0_i32, %c0_i32_0 : i32, i32, i32
  }
  func.func @transform_3(%arg0: i32, %arg1: i32) -> (i32, i32, i32) {
    %c0_i32 = arith.constant 0 : i32
    %c0_i32_0 = arith.constant 0 : i32
    return %arg0, %c0_i32, %arg1 : i32, i32, i32
  }
}

</mosaic_0001>

<bundles_post_ra>
// kernel: tpu_custom_call.1
= control target key start
LH: loop header
LB: loop body
LE: loop exit
PB: predicated region body
PF: predicated region fallthrough
CT: control target
= control target key end

     0   :  { %8 = vsyncpa [#allocation3], 0  ;;  %s1191_s0 = inlined_call_operand.vmem [shape: f32[2,256], index: 0, kind: input, shape index: {}]   ;;  %s1192_s1 = inlined_call_operand.vmem [shape: f32[2,2,256], index: 1, kind: input, shape index: {}]   ;;  %s1193_s2 = inlined_call_operand.vmem [shape: bf16[2,64,16], index: 2, kind: input, shape index: {}]   ;;  %s1194_s3 = inlined_call_operand.hbm [shape: f32[2,4,256], index: 3, kind: output, shape index: {}]  }
   0x1   :  { %10 = vsyncpa [#allocation3 + $0x1], 0  ;;  %s997_s12 = smov 0   ;;  %s999_s13 = smov 0  }
   0x2   :  { %s1001_s14 = smov 0   ;;  %s1003_s15 = smov 0  }
   0x3   :  { %s1005_s16 = smov 0   ;;  %s1007_s17 = smov 0  }
   0x4 LB: > { %s804_s18 = sadd.s32 4294967295, %s973_s17   ;;  %s805_s19 = sadd.s32 4294967294, %s973_s17   ;;  %s973_s17 = sphi %s1007_s17, %s16_s17   ;;  %s969_s16 = sphi %s1005_s16, %s1201_s16   ;;  %s965_s15 = sphi %s1003_s15, %s1200_s15   ;;  %s961_s14 = sphi %s1001_s14, %s1199_s14   ;;  %s957_s13 = sphi %s999_s13, %s1198_s13   ;;  %s953_s12 = sphi %s997_s12, %s1197_s12  }
   0x5   : > { %s28_s20 = sadd.s32 1, %s969_s16  ;;  %s117_s21 = sadd.s32 1, %s961_s14 }
   0x6   : > { %p30_p0 = scmp.ge.s32.totalorder %s28_s20, 2  ;;  %p127_p1 = scmp.ne.s32.totalorder %s961_s14, %s957_s13 }
   0x7   : > { %p128_p2 = scmp.eq.s32.totalorder %s804_s18, 1  ;;  %p133_p3 = scmp.ne.s32.totalorder %s957_s13, %s953_s12 }
   0x8   : > { %s1203_s20 = smov (%p30_p0, %s28_s20), 0  ;;  %p134_p5 = scmp.eq.s32.totalorder %s805_s19, 1 }
   0x9   : > { %p1037_p4 = por %p128_p2, %p127_p1  ;;  %s112_s23 = ssub.s32 %s969_s16, %s1203_s20 }
   0xa   : > { %p809_p6 = scmp.ge.s32.totalorder %s973_s17, 1  ;;  %p115_p7 = scmp.eq.s32.totalorder %s112_s23, 0 }
   0xb   : > { %p1044_p8 = por %p134_p5, %p133_p3  ;;  %p182_p9 = scmp.lt.s32.totalorder %s973_s17, 3 }
   0xc   : > { %s1050_s25 = scalar_select %p115_p7, %s961_s14, %s117_s21  }
   0xd   : > { %p183_p10 = pnand %p809_p6, %p182_p9 }
   0xe   : > { %p227_p11 = scmp.lt.s32.totalorder (!%p183_p10), %s965_s15, 1  ;;  %v975_v0 = vmov (!%p183_p10), 0   ;;  %v243_v1 = vld [vmem:[%s1191_s0] sm:$0xf] (!%p183_p10)  ;;  %v251_v3 = vlaneseq (!%p183_p10)  ;;  %vm464_vm8 = vcmask (!%p183_p10), 130048   ;;  %s217_s10 = sand.u32 (!%p183_p10), 1, %s957_s13  }
   0xf   : > { %186 = sbr.rel (%p183_p10) target bundleno = 314 (0x13a), region = 32  ;;  %509 = vmatprep.mubr.bf16.mxu0 (!%p183_p10), %v975_v0  ;;  %529 = vmatprep.mubr.bf16.mxu1 (!%p183_p10), %v975_v0  ;;  %s1135_s11 = sshll.u32 (!%p183_p10), %s217_s10, 3 }
  0x10   : > { %v1067_v6 = vshrl.u32 (!%p183_p10), %v251_v3, 7  ;;  %s830_s18 = sshll.u32 (!%p183_p10), %s965_s15, 7  ;;  %s219_s19 = scalar_lea.vmem (!%p183_p10), [#allocation2], %s1135_s11 }
  0x11   : > { %s701_s21 = sshll.u32 (!%p183_p10), %s219_s19, 4  ;;  %s685_s28 = scalar_lea.sflag (!%p183_p10), [#allocation3], %s217_s10  ;;  %s1144_s21 = int_to_ptr.vmem [resolvable:$true] %s701_s21 }
  0x12   : > { %v256_v9 = vsub.s32 (!%p183_p10), 0, %v1067_v6  ;;  %v260_v10 = vsub.s32 (!%p183_p10), 2, %v1067_v6  ;;  %v1081_v17 = vadd.s32 (!%p183_p10), 8, %v1067_v6  ;;  %v348_v53 = vsub.s32 (!%p183_p10), 1, %v1067_v6  ;;  %s976_s29 = smov (!%p183_p10), [#allocation2]  }
  0x13   : > { %v352_v55 = vsub.s32 (!%p183_p10), 3, %v1067_v6 }
  0x16   : > { %s228_s26 = scalar_select %p227_p11, %s965_s15, 1 }
  0x17   : > { %s895_s15 = scalar_lea.vmem %s1144_s21, 128 }
  0x18   : > { %s828_s27 = sshll.u32 %s228_s26, 2  ;;  %s829_s30 = sshll.u32 %s228_s26, 5 }
  0x19   : > { %s234_s6 = scalar_lea.vmem %s1192_s1, %s828_s27  ;;  %s1065_s9 = scalar_lea.vmem %s1193_s2, %s829_s30 }
  0x1a   : > { %v244_v2 = vld [vmem:[%s234_s6] sm:$0xf]  ;;  %v892_v50 = vld [vmem:[%s1065_s9 + $0x10] sm:$0xff]   ;;  %v893_v51 = vld [vmem:[%s1065_s9 + $0x8] sm:$0xff]   ;;  %s1142_s27 = scalar_lea.hbm %s1194_s3, %s830_s18  ;;  %p896_p12 = scmp.ne.s32.totalorder %s1144_s21, %s895_s15 }
  0x1b   : > { %v245_v4 = vadd.f32 %v244_v2, %v243_v1  ;;  %v891_v49 = vld [vmem:[%s1065_s9] sm:$0xff]   ;;  %v894_v52 = vld [vmem:[%s1065_s9 + $0x18] sm:$0xff]   ;;  %s899_s30 = sshll.u32 %s976_s29, 4  ;;  %s900_s30 = int_to_ptr.vmem [resolvable:$false] %s899_s30 }
  0x1c   : > { %p897_p13 = pnand %p896_p12, %p1037_p4  ;;  %s901_s4 = scalar_lea.vmem %s900_s30, 256 }
  0x1d   : > { %v246_v5 = vmul.f32 1.0666667, %v245_v4  ;;  %p902_p1 = scmp.lt.s32.totalorder %s1144_s21, %s900_s30  ;;  %p903_p2 = scmp.lt.s32.totalorder %s901_s4, %s895_s15 }
  0x1e   : > { %p898_p0 = pneg %p897_p13 }
  0x1f   : > { %v247_v7 = vadd.f32 -0.5, %v246_v5  ;;  %p904_p3 = por %p903_p2, %p902_p1 }
  0x21   : > { %v248_v8 = vfloor.f32 %v247_v7  ;;  %p905_p5 = pnand %p904_p3, %p898_p0 }
  0x23   : > { %v1071_v11 = vsub.f32 %v247_v7, %v248_v8  ;;  %v833_v12 = vtrunc.f32 %v248_v8 }
  0x25   : > { %v1073_v13 = vcvt.f32.s32 %v833_v12  ;;  %v1076_v14 = vsub.f32 1.0, %v1071_v11  ;;  %v327_v15 = vrot.slane %v1071_v11, %v260_v10  ;;  %v323_v16 = vrot.slane %v1071_v11, %v256_v9 }
  0x26   : > { %v411_v59 = vrot.slane %v1071_v11, %v348_v53  ;;  %v415_v4 = vrot.slane %v1071_v11, %v352_v55 }
  0x27   : > { %v261_v18 = vrot.slane %v1073_v13, %v260_v10  ;;  %v283_v19 = vrot.slane %v1076_v14, %v260_v10  ;;  %v1086_v20 = vadd.s32 1, %v1073_v13  ;;  %v257_v21 = vrot.slane %v1073_v13, %v256_v9 }
  0x28   : > { %v279_v22 = vrot.slane %v1076_v14, %v256_v9  ;;  %v337_v27 = vrot.slane %v327_v15, %v256_v9  ;;  %v333_v30 = vrot.slane %v323_v16, %v256_v9  ;;  %v349_v54 = vrot.slane %v1073_v13, %v348_v53 }
  0x29   : > { %v269_v23 = vrot.slane %v261_v18, %v256_v9  ;;  %v293_v24 = vrot.slane %v283_v19, %v256_v9  ;;  %v306_v25 = vrot.slane %v1086_v20, %v260_v10  ;;  %v302_v26 = vrot.slane %v1086_v20, %v256_v9 }
  0x2a   : > { %v265_v28 = vrot.slane %v257_v21, %v256_v9  ;;  %v289_v29 = vrot.slane %v279_v22, %v256_v9  ;;  %v391_v56 = vrot.slane %v1086_v20, %v348_v53  ;;  %v357_v57 = vrot.slane %v349_v54, %v348_v53 }
  0x2b   : > { %vm271_vm0 = vcmp.eq.s32.totalorder %v1067_v6, %v269_v23  ;;  %vm273_vm1 = vcmp.eq.s32.totalorder %v1081_v17, %v269_v23  ;;  %v314_v31 = vrot.slane %v306_v25, %v256_v9  ;;  %v310_v32 = vrot.slane %v302_v26, %v256_v9 }
  0x2c   : > { %v295_v33 = vsel %vm271_vm0, %v293_v24, 0.0  ;;  %v297_v34 = vsel %vm273_vm1, %v293_v24, 0.0  ;;  %vm270_vm2 = vcmp.eq.s32.totalorder %v1067_v6, %v265_v28  ;;  %vm272_vm3 = vcmp.eq.s32.totalorder %v1081_v17, %v265_v28 }
  0x2d   : > { %vm316_vm4 = vcmp.eq.s32.totalorder %v1067_v6, %v314_v31  ;;  %vm318_vm5 = vcmp.eq.s32.totalorder %v1081_v17, %v314_v31  ;;  %v294_v35 = vsel %vm270_vm2, %v289_v29, 0.0  ;;  %v296_v36 = vsel %vm272_vm3, %v289_v29, 0.0 }
  0x2e   : > { %v339_v37 = vsel %vm316_vm4, %v337_v27, 0.0  ;;  %v341_v38 = vsel %vm318_vm5, %v337_v27, 0.0  ;;  %vm315_vm6 = vcmp.eq.s32.totalorder %v1067_v6, %v310_v32  ;;  %vm317_vm7 = vcmp.eq.s32.totalorder %v1081_v17, %v310_v32 }
  0x2f   : > { %v343_v39 = vadd.f32 %v339_v37, %v295_v33  ;;  %v345_v40 = vadd.f32 %v341_v38, %v297_v34  ;;  %v338_v41 = vsel %vm315_vm6, %v333_v30, 0.0  ;;  %v340_v42 = vsel %vm317_vm7, %v333_v30, 0.0 }
  0x30   : > { %v342_v43 = vadd.f32 %v338_v41, %v294_v35  ;;  %v344_v44 = vadd.f32 %v340_v42, %v296_v36  ;;  %v369_v58 = vrot.slane %v1076_v14, %v348_v53  ;;  %v353_v60 = vrot.slane %v1073_v13, %v352_v55 }
  0x31   : > { %v443_v45 = vpack.c.bf16 %v345_v40, %v343_v39  ;;  %v1100_v46 = vadd.f32 %v345_v40, %v343_v39  ;;  %v395_v61 = vrot.slane %v1086_v20, %v352_v55  ;;  %v399_v62 = vrot.slane %v391_v56, %v348_v53 }
  0x32   : > { %v442_v47 = vpack.c.bf16 %v344_v44, %v342_v43  ;;  %v1102_v48 = vadd.f32 %v344_v44, %v342_v43  ;;  %vm362_vm9 = vcmp.eq.s32.totalorder %v1067_v6, %v357_v57  ;;  %v379_v63 = vrot.slane %v369_v58, %v348_v53 }
  0x33   : > { %477 = vmatprep.subr.bf16.mxu0 %v443_v45  ;;  %831 = vmatprep.subr.bf16.mxu1 %v443_v45  ;;  %v421_v1 = vrot.slane %v411_v59, %v348_v53  ;;  %v361_v2 = vrot.slane %v353_v60, %v348_v53  ;;  %v403_v3 = vrot.slane %v395_v61, %v348_v53  ;;  %v644_v23 = vrot.slane %v1100_v46, 4 }
  0x34   : > { %478 = vmatpush1.bf16.msra.mxu0 %v442_v47  ;;  %832 = vmatpush1.bf16.msra.mxu1 %v442_v47  ;;  %vm404_vm10 = vcmp.eq.s32.totalorder %v1067_v6, %v399_v62  ;;  %vm364_vm11 = vcmp.eq.s32.totalorder %v1081_v17, %v357_v57  ;;  %vm406_vm12 = vcmp.eq.s32.totalorder %v1081_v17, %v399_v62  ;;  %v384_v5 = vsel %vm362_vm9, %v379_v63, 0.0 }
  0x35   : > { %v426_v8 = vsel %vm404_vm10, %v421_v1, 0.0  ;;  %vm363_vm13 = vcmp.eq.s32.totalorder %v1067_v6, %v361_v2  ;;  %vm405_vm14 = vcmp.eq.s32.totalorder %v1067_v6, %v403_v3  ;;  %v425_v9 = vrot.slane %v415_v4, %v348_v53 }
  0x36   : > { %v386_v10 = vsel %vm364_vm11, %v379_v63, 0.0  ;;  %v428_v12 = vsel %vm406_vm12, %v421_v1, 0.0  ;;  %vm365_vm15 = vcmp.eq.s32.totalorder %v1081_v17, %v361_v2  ;;  %vm407_vm0 = vcmp.eq.s32.totalorder %v1081_v17, %v403_v3 }
  0x37   : > { %819 = vmatmul.mubr.msk.bf16.vlgmr.msra.gmra.mrb[0].mxu0 %vm464_vm8, %v891_v49  ;;  %821 = vmatmul.mubr.msk.bf16.vlgmr.msra.gmra.mrb[0].mxu1 %vm464_vm8, %v892_v50  ;;  %v430_v11 = vadd.f32 %v426_v8, %v384_v5  ;;  %v432_v15 = vadd.f32 %v428_v12, %v386_v10  ;;  %v429_v18 = vsel %vm407_vm0, %v425_v9, 0.0  ;;  %v637_v24 = vrot.slane %v1102_v48, 4 }
  0x38   : > { %519 = vmatprep.mubr.bf16.mxu0 %v975_v0  ;;  %539 = vmatprep.mubr.bf16.mxu1 %v975_v0  ;;  %v373_v0 = vrot.slane %v1076_v14, %v352_v55  ;;  %v427_v14 = vsel %vm405_vm14, %v425_v9, 0.0  ;;  %v645_v17 = vadd.f32 %v644_v23, %v1100_v46  ;;  %vm666_vm1 = vcmask 1041409  }
  0x39   : > { %v622_v19 = vadd.f32 %v432_v15, %v430_v11  ;;  %v638_v32 = vadd.f32 %v637_v24, %v1102_v48  ;;  %vm668_vm2 = vcmask 1042434   ;;  %vm670_vm3 = vcmask 1043459  }
  0x3a   : > { %v383_v7 = vrot.slane %v373_v0, %v348_v53  ;;  %v646_v45 = vrot.slane %v645_v17, 2 }
  0x3b   : > { %v623_v6 = vrot.slane %v622_v19, 4  ;;  %v639_v50 = vrot.slane %v638_v32, 2 }
  0x3c   : > { %v385_v13 = vsel %vm363_vm13, %v383_v7, 0.0  ;;  %v387_v16 = vsel %vm365_vm15, %v383_v7, 0.0  ;;  %v647_v59 = vadd.f32 %v646_v45, %v645_v17 }
  0x3d   : > { %v431_v20 = vadd.f32 %v427_v14, %v385_v13  ;;  %v433_v21 = vadd.f32 %v429_v18, %v387_v16  ;;  %v624_v31 = vadd.f32 %v623_v6, %v622_v19  ;;  %v640_v1 = vadd.f32 %v639_v50, %v638_v32 }
  0x3e   : > { %v648_v32 = vrot.slane %v647_v59, 1 }
  0x3f   : > { %820 = vmatmul.mubr.msk.bf16.gmra.mrb[4].mxu0 %vm464_vm8, %v893_v51  ;;  %822 = vmatmul.mubr.msk.bf16.gmra.mrb[4].mxu1 %vm464_vm8, %v894_v52  ;;  %v629_v22 = vadd.f32 %v433_v21, %v431_v20  ;;  %v625_v49 = vrot.slane %v624_v31, 2 }
  0x41   : > { %v630_v27 = vrot.slane %v629_v22, 4  ;;  %v626_v0 = vadd.f32 %v625_v49, %v624_v31  ;;  %v649_v49 = vadd.f32 %v648_v32, %v647_v59 }
  0x43   : > { %v631_v44 = vadd.f32 %v630_v27, %v629_v22 }
  0x45   : > { %v632_v58 = vrot.slane %v631_v44, 2 }
  0x47   : > { %v633_v22 = vadd.f32 %v632_v58, %v631_v44 }
 0x10a   : > { %v511_v25 = vpop.f32.mrb[0].mxu0  ;;  %v531_v26 = vpop.f32.mrb[0].mxu1 }
 0x10b   : > { %v558_v28 = vmul.f32 %v531_v26, %v430_v11  ;;  %v513_v29 = vpop.f32.mrb[1].mxu0  ;;  %v533_v30 = vpop.f32.mrb[1].mxu1  ;;  %v550_v36 = vmul.f32 %v511_v25, %v430_v11  ;;  %v627_v25 = vrot.slane %v626_v0, 1 }
 0x10c   : > { %v559_v33 = vmul.f32 %v533_v30, %v431_v20  ;;  %v515_v34 = vpop.f32.mrb[2].mxu0  ;;  %v535_v35 = vpop.f32.mrb[2].mxu1  ;;  %v551_v41 = vmul.f32 %v513_v29, %v431_v20  ;;  %v641_v29 = vrot.slane %v640_v1, 1 }
 0x10d   : > { %v552_v37 = vmul.f32 %v515_v34, %v432_v15  ;;  %v560_v38 = vmul.f32 %v535_v35, %v432_v15  ;;  %v517_v39 = vpop.f32.mrb[3].mxu0  ;;  %v537_v40 = vpop.f32.mrb[3].mxu1 }
 0x10e   : > { %v553_v42 = vmul.f32 %v517_v39, %v433_v21  ;;  %v561_v43 = vmul.f32 %v537_v40, %v433_v21  ;;  %v642_v44 = vadd.f32 %v641_v29, %v640_v1 }
 0x10f   : > { %v566_v46 = vadd.f32 %v552_v37, %v550_v36  ;;  %v594_v47 = vadd.f32 %v560_v38, %v558_v28  ;;  %v628_v36 = vadd.f32 %v627_v25, %v626_v0 }
 0x110   : > { %v573_v51 = vadd.f32 %v553_v42, %v551_v41  ;;  %v601_v52 = vadd.f32 %v561_v43, %v559_v33 }
 0x111   : > { %v567_v48 = vrot.slane %v566_v46, 4  ;;  %v595_v53 = vrot.slane %v594_v47, 4 }
 0x112   : > { %v574_v54 = vrot.slane %v573_v51, 4  ;;  %v602_v55 = vrot.slane %v601_v52, 4  ;;  %v521_v56 = vpop.f32.mrb[4].mxu0  ;;  %v541_v57 = vpop.f32.mrb[4].mxu1 }
 0x113   : > { %v568_v60 = vadd.f32 %v567_v48, %v566_v46  ;;  %v562_v61 = vmul.f32 %v541_v57, %v430_v11  ;;  %v523_v62 = vpop.f32.mrb[5].mxu0  ;;  %v543_v63 = vpop.f32.mrb[5].mxu1  ;;  %v596_v2 = vadd.f32 %v595_v53, %v594_v47  ;;  %v554_v9 = vmul.f32 %v521_v56, %v430_v11 }
 0x114   : > { %v575_v3 = vadd.f32 %v574_v54, %v573_v51  ;;  %v563_v4 = vmul.f32 %v543_v63, %v431_v20  ;;  %v525_v5 = vpop.f32.mrb[6].mxu0  ;;  %v545_v7 = vpop.f32.mrb[6].mxu1  ;;  %v603_v8 = vadd.f32 %v602_v55, %v601_v52  ;;  %v555_v16 = vmul.f32 %v523_v62, %v431_v20 }
 0x115   : > { %v556_v10 = vmul.f32 %v525_v5, %v432_v15  ;;  %v564_v12 = vmul.f32 %v545_v7, %v432_v15  ;;  %v527_v13 = vpop.f32.mrb[7].mxu0  ;;  %v547_v14 = vpop.f32.mrb[7].mxu1  ;;  %v569_v23 = vrot.slane %v568_v60, 2  ;;  %v597_v26 = vrot.slane %v596_v2, 2 }
 0x116   : > { %v557_v18 = vmul.f32 %v527_v13, %v433_v21  ;;  %v565_v19 = vmul.f32 %v547_v14, %v433_v21  ;;  %v576_v27 = vrot.slane %v575_v3, 2  ;;  %v604_v30 = vrot.slane %v603_v8, 2 }
 0x117   : > { %v580_v6 = vadd.f32 %v556_v10, %v554_v9  ;;  %v608_v24 = vadd.f32 %v564_v12, %v562_v61  ;;  %v634_v20 = vrot.slane %v633_v22, 1  ;;  %v570_v34 = vadd.f32 %v569_v23, %v568_v60 }
 0x118   : > { %v587_v17 = vadd.f32 %v557_v18, %v555_v16  ;;  %v615_v28 = vadd.f32 %v565_v19, %v563_v4  ;;  %v598_v37 = vadd.f32 %v597_v26, %v596_v2  ;;  %v577_v38 = vadd.f32 %v576_v27, %v575_v3 }
 0x119   : > { %v581_v31 = vrot.slane %v580_v6, 4  ;;  %v609_v11 = vrot.slane %v608_v24, 4  ;;  %v605_v41 = vadd.f32 %v604_v30, %v603_v8  ;;  %v635_v47 = vadd.f32 %v634_v20, %v633_v22 }
 0x11a   : > { %v588_v15 = vrot.slane %v587_v17, 4  ;;  %v616_v33 = vrot.slane %v615_v28, 4  ;;  %v571_v50 = vrot.slane %v570_v34, 1  ;;  %v599_v48 = vrot.slane %v598_v37, 1 }
 0x11b   : > { %v582_v21 = vadd.f32 %v581_v31, %v580_v6  ;;  %v610_v35 = vadd.f32 %v609_v11, %v608_v24  ;;  %v578_v53 = vrot.slane %v577_v38, 1  ;;  %v606_v56 = vrot.slane %v605_v41, 1 }
 0x11c   : > { %v589_v39 = vadd.f32 %v588_v15, %v587_v17  ;;  %v617_v40 = vadd.f32 %v616_v33, %v615_v28  ;;  %v650_v60 = vmul.f32 %v642_v44, %v628_v36  ;;  %v651_v63 = vmul.f32 %v649_v49, %v635_v47 }
 0x11d   : > { %v583_v42 = vrot.slane %v582_v21, 2  ;;  %v611_v43 = vrot.slane %v610_v35, 2  ;;  %v572_v0 = vadd.f32 %v571_v50, %v570_v34  ;;  %v600_v1 = vadd.f32 %v599_v48, %v598_v37 }
 0x11e   : > { %v590_v45 = vrot.slane %v589_v39, 2  ;;  %v618_v46 = vrot.slane %v617_v40, 2  ;;  %v579_v2 = vadd.f32 %v578_v53, %v577_v38  ;;  %v607_v4 = vadd.f32 %v606_v56, %v605_v41 }
 0x11f   : > { %v584_v51 = vadd.f32 %v583_v42, %v582_v21  ;;  %v612_v52 = vadd.f32 %v611_v43, %v610_v35  ;;  %vm652_vm4 = vcmp.gt.f32.partialorder %v650_v60, 0.9999  ;;  %vm653_vm5 = vcmp.gt.f32.partialorder %v651_v63, 0.9999 }
 0x120   : > { %v591_v54 = vadd.f32 %v590_v45, %v589_v39  ;;  %v619_v55 = vadd.f32 %v618_v46, %v617_v40 }
 0x121   : > { %v585_v57 = vrot.slane %v584_v51, 1  ;;  %v613_v58 = vrot.slane %v612_v52, 1 }
 0x122   : > { %v592_v61 = vrot.slane %v591_v54, 1  ;;  %v620_v62 = vrot.slane %v619_v55, 1 }
 0x123   : > { %v586_v59 = vadd.f32 %v585_v57, %v584_v51  ;;  %v614_v5 = vadd.f32 %v613_v58, %v612_v52 }
 0x124   : > { %v593_v3 = vadd.f32 %v592_v61, %v591_v54  ;;  %v621_v8 = vadd.f32 %v620_v62, %v619_v55 }
 0x125   : > { %v667_v7 = vsel %vm666_vm1, %v586_v59, %v572_v0 }
 0x126   : > { %v669_v9 = vsel %vm668_vm2, %v600_v1, %v667_v7  ;;  %v672_v10 = vsel %vm666_vm1, %v593_v3, %v579_v2 }
 0x127   : > { %v671_v12 = vsel %vm670_vm3, %v614_v5, %v669_v9  ;;  %v673_v13 = vsel %vm668_vm2, %v607_v4, %v672_v10 }
 0x128   : > { %v674_v14 = vsel %vm670_vm3, %v621_v8, %v673_v13  ;;  %v677_v16 = vsel %vm652_vm4, %v671_v12, 0.0 }
 0x129   : > { %v678_v18 = vsel %vm653_vm5, %v674_v14, 0.0 }
 0x12a   : > { %v681_v19 = vcombine.low %v677_v16, %v678_v18 }
 0x12c   : > { %683 = vst [vmem:[%s219_s19] sm:$0xff] %v681_v19 }
 0x12d   : > { %908 = shalt.err (!%p905_p5)
}
 0x12e   : > { %s909_s5 = scalar_lea.hbm %s1142_s27, 128  ;;  %s913_s8 = scalar_lea.hbm %s1194_s3, 256 }
 0x12f   : > { %p910_p6 = scmp.ne.s32.totalorder %s1142_s27, %s909_s5  ;;  %p914_p10 = scmp.lt.u32.totalorder %s1142_s27, %s1194_s3 }
 0x130   : > { %p915_p11 = scmp.lt.u32.totalorder %s913_s8, %s909_s5  ;;  %p917_p13 = scmp.lt.u32.totalorder %s909_s5, %s1142_s27 }
 0x131   : > { %p911_p7 = pnand %p910_p6, %p1037_p4 }
 0x132   : > { %p916_p12 = por %p915_p11, %p914_p10 }
 0x133   : > { %p912_p9 = pneg %p911_p7 }
 0x134   : > { %p918_p0 = por %p917_p13, %p916_p12 }
 0x136   : > { %p919_p1 = pnand %p918_p0, %p912_p9 }
 0x138   : > { %922 = shalt.err (!%p919_p1)
}
 0x139   : > { %835 = dma.vmem_to_hbm [thread:$0]  (%p1037_p4), %s1144_s21, 128, %s1142_s27, %s685_s28  }
 0x13a PF: > { %p841_p2 = scmp.ge.s32.totalorder %s973_s17, 2  ;;  %s713_s11 = sand.u32 1, %s953_s12  }
 0x13b   : > { %s714_s18 = scalar_lea.sflag [#allocation3], %s713_s11 }
 0x13c   : > { %p838_p3 = pnand %p841_p2, %p1044_p8 }
 0x13e   : > { %948 = dma.done.wait (!%p838_p3), %s714_s18, 128  }
 0x13f   : > { %950 = vsyncadd (!%p838_p3), %s714_s18, 4294967168  ;;  %s16_s17 = sadd.s32 1, %s973_s17   ;;  %s1197_s12 = smov %s957_s13 }
 0x140   : > { %p13_p5 = scmp.ge.s32.totalorder %s16_s17, 4   ;;  %s1198_s13 = smov %s961_s14 }
 0x141   : > { %s1199_s14 = smov %s1050_s25  ;;  %s1200_s15 = smov %s969_s16 }
 0x142   : > { %s1201_s16 = smov %s1203_s20  ;;  %15 = sbr.rel (!%p13_p5) target bundleno = 4 (0x4), region = 73 }
 0x149   :  { %719 = vsyncpa [#allocation3], 1 }
 0x14a   :  { %721 = vsyncpa [#allocation3 + $0x1], 1 }

</bundles_post_ra>
